<compile_context>
chip_gen: v5e
topology: v5e:2x2
jax: 0.10.0
libtpu: 0.0.40
codegen_flags: <defaults>
</compile_context>

<pallas_src>
import functools

import jax
import jax.numpy as jnp
from jax.experimental import pallas as pl
from jax.experimental.pallas import tpu as pltpu

_BN_EPS = 1e-5
_LANE = 128
_SUBLANE = 8


def _round_up(x, m):
    return (x + m - 1) // m * m


def _fold_conv_bn(w, bias, gamma, beta, mean, var):
    """Fold eval-mode BatchNorm into a 1x1 conv: returns (scaled W, shift)."""
    scale = gamma / jnp.sqrt(var + _BN_EPS)          # (C_out,)
    return w * scale[:, None], beta + (bias - mean) * scale


# ----------------------------- Pallas kernel --------------------------------

def _make_tcn_kernel(nb, c_pad, compute_dtype):
    """Fused TemporalConvNet kernel over one lane tile.

    x_ref: (c_pad, Lt)            activations, channels on sublanes, B*L on lanes
    w_ref: (nb, 3*c_pad, c_pad)   per block: rows [0,C)=conv1(BN folded),
                                  [C,2C)=downsample (or identity), [2C,3C)=conv2
    s_ref: (nb, 3*c_pad, 1)       matching folded shifts (always f32)
    o_ref: (c_pad, Lt)
    """
    def kernel(x_ref, w_ref, s_ref, o_ref):
        cur = x_ref[...]                                        # (C, Lt)
        for i in range(nb):                                     # static unroll
            w = w_ref[i]                                        # (3C, C)
            s = s_ref[i]                                        # (3C, 1) f32
            # conv1 + downsample share the x operand -> one MXU dot, split rows.
            hv = jnp.dot(w[: 2 * c_pad], cur,
                         preferred_element_type=jnp.float32) + s[: 2 * c_pad]
            h = jnp.maximum(hv[:c_pad], 0.0)                    # conv1+BN1+ReLU
            res = hv[c_pad:]                                    # downsample / identity
            out = jnp.dot(w[2 * c_pad:], h.astype(compute_dtype),
                          preferred_element_type=jnp.float32) + s[2 * c_pad:]
            out = jnp.maximum(out, 0.0)                         # conv2+BN2+ReLU
            cur = jnp.maximum(out + res, 0.0).astype(compute_dtype)  # add+ReLU
        o_ref[...] = cur.astype(o_ref.dtype)
    return kernel


# ------------------------------- wrapper -------------------------------------

@functools.partial(jax.jit, static_argnames=("compute_dtype", "lane_tile_cap"))
def temporal_conv_net_forward(x_ncw, params, *, compute_dtype=jnp.float32,
                              lane_tile_cap=2048):
    """x_ncw: (B, C_in, L) NCW (PyTorch layout).  Returns (B, C_last, L)."""
    bsz, c_in, length = x_ncw.shape
    chans = [c_in] + [int(blk["w1"].shape[0]) for blk in params]
    nb = len(params)
    c_pad = _round_up(max(max(chans), _SUBLANE), _SUBLANE)

    # ---- pack BN-folded weights into one (nb, 3C, C) operand + (nb, 3C, 1) shifts
    w_blocks, s_blocks = [], []
    for blk, ci, co in zip(params, chans[:-1], chans[1:]):
        w1f, sh1 = _fold_conv_bn(blk["w1"][..., 0], blk["b1"], *blk["bn1"])
        w2f, sh2 = _fold_conv_bn(blk["w2"][..., 0], blk["b2"], *blk["bn2"])
        if "wd" in blk:
            wd, shd = blk["wd"][..., 0], blk["bd"]
        else:  # identity residual as an identity downsample (padded rows stay 0)
            wd = jnp.eye(ci, dtype=jnp.float32)
            shd = jnp.zeros((ci,), jnp.float32)
        wb = jnp.zeros((3 * c_pad, c_pad), jnp.float32)
        wb = wb.at[:co, :ci].set(w1f)
        wb = wb.at[c_pad:c_pad + wd.shape[0], :ci].set(wd)
        wb = wb.at[2 * c_pad:2 * c_pad + co, :co].set(w2f)
        sb = jnp.zeros((3 * c_pad, 1), jnp.float32)
        sb = sb.at[:co, 0].set(sh1)
        sb = sb.at[c_pad:c_pad + shd.shape[0], 0].set(shd)
        sb = sb.at[2 * c_pad:2 * c_pad + co, 0].set(sh2)
        w_blocks.append(wb)
        s_blocks.append(sb)
    w_pack = jnp.stack(w_blocks).astype(compute_dtype)   # (nb, 3C, C)
    s_pack = jnp.stack(s_blocks)                          # (nb, 3C, 1), stays f32

    # ---- layout: (B, C, L) -> (C_pad, N_pad), B folded into the lane axis
    n = bsz * length
    lane_tile = min(_round_up(n, _LANE), _round_up(lane_tile_cap, _LANE))
    n_pad = _round_up(n, lane_tile)                       # no dropped tail tiles
    x_cn = jnp.transpose(x_ncw, (1, 0, 2)).reshape(c_in, n)
    x_cn = jnp.pad(x_cn, ((0, c_pad - c_in), (0, n_pad - n))).astype(compute_dtype)

    grid = (n_pad // lane_tile,)
    y_cn = pl.pallas_call(
        _make_tcn_kernel(nb, c_pad, compute_dtype),
        out_shape=jax.ShapeDtypeStruct((c_pad, n_pad), x_ncw.dtype),
        grid=grid,
        in_specs=[
            pl.BlockSpec((c_pad, lane_tile), lambda t: (0, t)),
            pl.BlockSpec((nb, 3 * c_pad, c_pad), lambda t: (0, 0, 0)),
            pl.BlockSpec((nb, 3 * c_pad, 1), lambda t: (0, 0, 0)),
        ],
        out_specs=pl.BlockSpec((c_pad, lane_tile), lambda t: (0, t)),
        compiler_params=pltpu.CompilerParams(
            dimension_semantics=("parallel",)),
    )(x_cn, w_pack, s_pack)

    c_last = chans[-1]
    y = y_cn[:c_last, :n].reshape(c_last, bsz, length)
    return jnp.transpose(y, (1, 0, 2))


# --------------------------- parameter init ----------------------------------

def init_temporal_conv_net(key, num_inputs, num_channels, kernel_size):
    assert kernel_size == 1, (
        "Only kernel_size=1 is runnable: the reference module has no Chomp1d, "
        "so K>1 makes out/res lengths mismatch in PyTorch itself.")
    params = []
    c_prev = num_inputs
    for c_out in num_channels:
        keys = jax.random.split(key, 7)
        key = keys[0]
        bound1 = 1.0 / (c_prev * kernel_size) ** 0.5
        bound2 = 1.0 / (c_out * kernel_size) ** 0.5
        blk = dict(
            # conv weights: normal(0, 0.01) per init_weights(); PyTorch layout
            # (C_out, C_in, K).  Biases: Conv1d default uniform(+-1/sqrt(fan_in)).
            w1=jax.random.normal(keys[1], (c_out, c_prev, kernel_size), jnp.float32) * 0.01,
            b1=jax.random.uniform(keys[2], (c_out,), jnp.float32, -bound1, bound1),
            w2=jax.random.normal(keys[3], (c_out, c_out, kernel_size), jnp.float32) * 0.01,
            b2=jax.random.uniform(keys[4], (c_out,), jnp.float32, -bound2, bound2),
            # BatchNorm1d eval defaults: gamma=1, beta=0, running mean=0, var=1
            bn1=(jnp.ones((c_out,), jnp.float32), jnp.zeros((c_out,), jnp.float32),
                 jnp.zeros((c_out,), jnp.float32), jnp.ones((c_out,), jnp.float32)),
            bn2=(jnp.ones((c_out,), jnp.float32), jnp.zeros((c_out,), jnp.float32),
                 jnp.zeros((c_out,), jnp.float32), jnp.ones((c_out,), jnp.float32)),
        )
        if c_prev != c_out:
            bound_d = 1.0 / c_prev ** 0.5
            blk["wd"] = jax.random.normal(keys[5], (c_out, c_prev, 1), jnp.float32) * 0.01
            blk["bd"] = jax.random.uniform(keys[6], (c_out,), jnp.float32, -bound_d, bound_d)
        params.append(blk)
        c_prev = c_out
    return params


# ------------------------- pure-jnp reference check --------------------------

def _ref_forward(x_ncw, params):
    def conv1x1(xin, w, bias):  # xin (B,C,L), w (Co,Ci), bias (Co,)
        return jnp.einsum("bcl,oc->bol", xin, w) + bias[None, :, None]

    def bn(xin, gamma, beta, mean, var):
        inv = gamma / jnp.sqrt(var + _BN_EPS)
        return (xin - mean[None, :, None]) * inv[None, :, None] + beta[None, :, None]

    x = x_ncw
    for blk in params:
        out = jnp.maximum(bn(conv1x1(x, blk["w1"][..., 0], blk["b1"]), *blk["bn1"]), 0.0)
        out = jnp.maximum(bn(conv1x1(out, blk["w2"][..., 0], blk["b2"]), *blk["bn2"]), 0.0)
        res = conv1x1(x, blk["wd"][..., 0], blk["bd"]) if "wd" in blk else x
        x = jnp.maximum(out + res, 0.0)
    return x


# ----------------------------------- main ------------------------------------

if __name__ == "__main__":
    key = jax.random.PRNGKey(0)
    kx, kp = jax.random.split(key)
    B, C_IN, L = 2, 4, 16
    NUM_CHANNELS = [8, 16, 16]   # last block exercises the identity residual
    KERNEL_SIZE = 1              # only shape-valid configuration of the reference

    x = jax.random.normal(kx, (B, C_IN, L), jnp.float32)   # PyTorch NCW layout
    params = init_temporal_conv_net(kp, C_IN, NUM_CHANNELS, KERNEL_SIZE)
    y_ref = _ref_forward(x, params)

    # f32 path: exact match against the reference.
    y = jax.block_until_ready(temporal_conv_net_forward(x, params))
    assert y.shape == (B, NUM_CHANNELS[-1], L)
    assert jnp.allclose(y, y_ref, atol=1e-5, rtol=1e-4), float(jnp.max(jnp.abs(y - y_ref)))

    # bf16 activation/weight stream (the production setting on v6e/v7x): looser check.
    y_bf = jax.block_until_ready(
        temporal_conv_net_forward(x, params, compute_dtype=jnp.bfloat16))
    assert y_bf.shape == (B, NUM_CHANNELS[-1], L)
    assert jnp.allclose(y_bf, y_ref, atol=5e-2, rtol=5e-2), float(jnp.max(jnp.abs(y_bf - y_ref)))

    print("KERNEL_OK")
</pallas_src>

<mosaic_0001>
module attributes {stable_mosaic.version = 11 : i64} {
  func.func @kernel(%arg0: i32, %arg1: memref<16x128xf32, #tpu.memory_space<vmem>>, %arg2: memref<3x48x16xf32, #tpu.memory_space<vmem>>, %arg3: memref<3x48x1xf32, #tpu.memory_space<vmem>>, %arg4: memref<16x128xf32, #tpu.memory_space<vmem>>) attributes {dimension_semantics = [#tpu.dimension_semantics<parallel>], iteration_bounds = array<i64: 1>, scalar_prefetch = 0 : i64, scratch_operands = 0 : i64, tpu.core_type = #tpu.core_type<tc>, window_params = [{transform_indices = @transform_0, window_bounds = array<i64: 16, 128>}, {pipeline_mode = #tpu.pipeline_mode<synchronous>, transform_indices = @transform_1, window_bounds = array<i64: 3, 48, 16>}, {pipeline_mode = #tpu.pipeline_mode<synchronous>, transform_indices = @transform_2, window_bounds = array<i64: 3, 48, 1>}, {transform_indices = @transform_3, window_bounds = array<i64: 16, 128>}]} {
    %c0 = arith.constant 0 : index
    %c0_0 = arith.constant 0 : index
    %0 = vector.load %arg1[%c0, %c0_0] : memref<16x128xf32, #tpu.memory_space<vmem>>, vector<16x128xf32>
    %c0_1 = arith.constant 0 : index
    %c0_2 = arith.constant 0 : index
    %c0_3 = arith.constant 0 : index
    %1 = vector.load %arg2[%c0_1, %c0_2, %c0_3] : memref<3x48x16xf32, #tpu.memory_space<vmem>>, vector<1x48x16xf32>
    %2 = vector.shape_cast %1 : vector<1x48x16xf32> to vector<48x16xf32>
    %c0_4 = arith.constant 0 : index
    %c0_5 = arith.constant 0 : index
    %c0_6 = arith.constant 0 : index
    %3 = vector.load %arg3[%c0_4, %c0_5, %c0_6] : memref<3x48x1xf32, #tpu.memory_space<vmem>>, vector<1x48x1xf32>
    %4 = vector.shape_cast %3 : vector<1x48x1xf32> to vector<48x1xf32>
    %5 = vector.extract_strided_slice %2 {offsets = [0, 0], sizes = [32, 16], strides = [1, 1]} : vector<48x16xf32> to vector<32x16xf32>
    %cst = arith.constant dense<0.000000e+00> : vector<32x128xf32>
    %6 = tpu.matmul %5, %0, %cst {dimension_numbers = #tpu.dot_dimension_numbers<[1], [0], [0], [1], [0, 0, 1, 1], [], []>} : vector<32x16xf32>, vector<16x128xf32>, vector<32x128xf32> -> vector<32x128xf32>
    %7 = vector.extract_strided_slice %4 {offsets = [0, 0], sizes = [32, 1], strides = [1, 1]} : vector<48x1xf32> to vector<32x1xf32>
    %8 = vector.broadcast %7 : vector<32x1xf32> to vector<32x128xf32>
    %9 = arith.addf %6, %8 : vector<32x128xf32>
    %10 = vector.extract_strided_slice %9 {offsets = [0, 0], sizes = [16, 128], strides = [1, 1]} : vector<32x128xf32> to vector<16x128xf32>
    %cst_7 = arith.constant 0.000000e+00 : f32
    %11 = vector.broadcast %cst_7 : f32 to vector<16x128xf32>
    %12 = arith.maximumf %10, %11 : vector<16x128xf32>
    %13 = vector.extract_strided_slice %9 {offsets = [16, 0], sizes = [16, 128], strides = [1, 1]} : vector<32x128xf32> to vector<16x128xf32>
    %14 = vector.extract_strided_slice %2 {offsets = [32, 0], sizes = [16, 16], strides = [1, 1]} : vector<48x16xf32> to vector<16x16xf32>
    %cst_8 = arith.constant dense<0.000000e+00> : vector<16x128xf32>
    %15 = tpu.matmul %14, %12, %cst_8 {dimension_numbers = #tpu.dot_dimension_numbers<[1], [0], [0], [1], [0, 0, 1, 1], [], []>} : vector<16x16xf32>, vector<16x128xf32>, vector<16x128xf32> -> vector<16x128xf32>
    %16 = vector.extract_strided_slice %4 {offsets = [32, 0], sizes = [16, 1], strides = [1, 1]} : vector<48x1xf32> to vector<16x1xf32>
    %17 = vector.broadcast %16 : vector<16x1xf32> to vector<16x128xf32>
    %18 = arith.addf %15, %17 : vector<16x128xf32>
    %cst_9 = arith.constant 0.000000e+00 : f32
    %19 = vector.broadcast %cst_9 : f32 to vector<16x128xf32>
    %20 = arith.maximumf %18, %19 : vector<16x128xf32>
    %21 = arith.addf %20, %13 : vector<16x128xf32>
    %cst_10 = arith.constant 0.000000e+00 : f32
    %22 = vector.broadcast %cst_10 : f32 to vector<16x128xf32>
    %23 = arith.maximumf %21, %22 : vector<16x128xf32>
    %c1 = arith.constant 1 : index
    %c0_11 = arith.constant 0 : index
    %c0_12 = arith.constant 0 : index
    %24 = vector.load %arg2[%c1, %c0_11, %c0_12] : memref<3x48x16xf32, #tpu.memory_space<vmem>>, vector<1x48x16xf32>
    %25 = vector.shape_cast %24 : vector<1x48x16xf32> to vector<48x16xf32>
    %c1_13 = arith.constant 1 : index
    %c0_14 = arith.constant 0 : index
    %c0_15 = arith.constant 0 : index
    %26 = vector.load %arg3[%c1_13, %c0_14, %c0_15] : memref<3x48x1xf32, #tpu.memory_space<vmem>>, vector<1x48x1xf32>
    %27 = vector.shape_cast %26 : vector<1x48x1xf32> to vector<48x1xf32>
    %28 = vector.extract_strided_slice %25 {offsets = [0, 0], sizes = [32, 16], strides = [1, 1]} : vector<48x16xf32> to vector<32x16xf32>
    %cst_16 = arith.constant dense<0.000000e+00> : vector<32x128xf32>
    %29 = tpu.matmul %28, %23, %cst_16 {dimension_numbers = #tpu.dot_dimension_numbers<[1], [0], [0], [1], [0, 0, 1, 1], [], []>} : vector<32x16xf32>, vector<16x128xf32>, vector<32x128xf32> -> vector<32x128xf32>
    %30 = vector.extract_strided_slice %27 {offsets = [0, 0], sizes = [32, 1], strides = [1, 1]} : vector<48x1xf32> to vector<32x1xf32>
    %31 = vector.broadcast %30 : vector<32x1xf32> to vector<32x128xf32>
    %32 = arith.addf %29, %31 : vector<32x128xf32>
    %33 = vector.extract_strided_slice %32 {offsets = [0, 0], sizes = [16, 128], strides = [1, 1]} : vector<32x128xf32> to vector<16x128xf32>
    %cst_17 = arith.constant 0.000000e+00 : f32
    %34 = vector.broadcast %cst_17 : f32 to vector<16x128xf32>
    %35 = arith.maximumf %33, %34 : vector<16x128xf32>
    %36 = vector.extract_strided_slice %32 {offsets = [16, 0], sizes = [16, 128], strides = [1, 1]} : vector<32x128xf32> to vector<16x128xf32>
    %37 = vector.extract_strided_slice %25 {offsets = [32, 0], sizes = [16, 16], strides = [1, 1]} : vector<48x16xf32> to vector<16x16xf32>
    %cst_18 = arith.constant dense<0.000000e+00> : vector<16x128xf32>
    %38 = tpu.matmul %37, %35, %cst_18 {dimension_numbers = #tpu.dot_dimension_numbers<[1], [0], [0], [1], [0, 0, 1, 1], [], []>} : vector<16x16xf32>, vector<16x128xf32>, vector<16x128xf32> -> vector<16x128xf32>
    %39 = vector.extract_strided_slice %27 {offsets = [32, 0], sizes = [16, 1], strides = [1, 1]} : vector<48x1xf32> to vector<16x1xf32>
    %40 = vector.broadcast %39 : vector<16x1xf32> to vector<16x128xf32>
    %41 = arith.addf %38, %40 : vector<16x128xf32>
    %cst_19 = arith.constant 0.000000e+00 : f32
    %42 = vector.broadcast %cst_19 : f32 to vector<16x128xf32>
    %43 = arith.maximumf %41, %42 : vector<16x128xf32>
    %44 = arith.addf %43, %36 : vector<16x128xf32>
    %cst_20 = arith.constant 0.000000e+00 : f32
    %45 = vector.broadcast %cst_20 : f32 to vector<16x128xf32>
    %46 = arith.maximumf %44, %45 : vector<16x128xf32>
    %c2 = arith.constant 2 : index
    %c0_21 = arith.constant 0 : index
    %c0_22 = arith.constant 0 : index
    %47 = vector.load %arg2[%c2, %c0_21, %c0_22] : memref<3x48x16xf32, #tpu.memory_space<vmem>>, vector<1x48x16xf32>
    %48 = vector.shape_cast %47 : vector<1x48x16xf32> to vector<48x16xf32>
    %c2_23 = arith.constant 2 : index
    %c0_24 = arith.constant 0 : index
    %c0_25 = arith.constant 0 : index
    %49 = vector.load %arg3[%c2_23, %c0_24, %c0_25] : memref<3x48x1xf32, #tpu.memory_space<vmem>>, vector<1x48x1xf32>
    %50 = vector.shape_cast %49 : vector<1x48x1xf32> to vector<48x1xf32>
    %51 = vector.extract_strided_slice %48 {offsets = [0, 0], sizes = [32, 16], strides = [1, 1]} : vector<48x16xf32> to vector<32x16xf32>
    %cst_26 = arith.constant dense<0.000000e+00> : vector<32x128xf32>
    %52 = tpu.matmul %51, %46, %cst_26 {dimension_numbers = #tpu.dot_dimension_numbers<[1], [0], [0], [1], [0, 0, 1, 1], [], []>} : vector<32x16xf32>, vector<16x128xf32>, vector<32x128xf32> -> vector<32x128xf32>
    %53 = vector.extract_strided_slice %50 {offsets = [0, 0], sizes = [32, 1], strides = [1, 1]} : vector<48x1xf32> to vector<32x1xf32>
    %54 = vector.broadcast %53 : vector<32x1xf32> to vector<32x128xf32>
    %55 = arith.addf %52, %54 : vector<32x128xf32>
    %56 = vector.extract_strided_slice %55 {offsets = [0, 0], sizes = [16, 128], strides = [1, 1]} : vector<32x128xf32> to vector<16x128xf32>
    %cst_27 = arith.constant 0.000000e+00 : f32
    %57 = vector.broadcast %cst_27 : f32 to vector<16x128xf32>
    %58 = arith.maximumf %56, %57 : vector<16x128xf32>
    %59 = vector.extract_strided_slice %55 {offsets = [16, 0], sizes = [16, 128], strides = [1, 1]} : vector<32x128xf32> to vector<16x128xf32>
    %60 = vector.extract_strided_slice %48 {offsets = [32, 0], sizes = [16, 16], strides = [1, 1]} : vector<48x16xf32> to vector<16x16xf32>
    %cst_28 = arith.constant dense<0.000000e+00> : vector<16x128xf32>
    %61 = tpu.matmul %60, %58, %cst_28 {dimension_numbers = #tpu.dot_dimension_numbers<[1], [0], [0], [1], [0, 0, 1, 1], [], []>} : vector<16x16xf32>, vector<16x128xf32>, vector<16x128xf32> -> vector<16x128xf32>
    %62 = vector.extract_strided_slice %50 {offsets = [32, 0], sizes = [16, 1], strides = [1, 1]} : vector<48x1xf32> to vector<16x1xf32>
    %63 = vector.broadcast %62 : vector<16x1xf32> to vector<16x128xf32>
    %64 = arith.addf %61, %63 : vector<16x128xf32>
    %cst_29 = arith.constant 0.000000e+00 : f32
    %65 = vector.broadcast %cst_29 : f32 to vector<16x128xf32>
    %66 = arith.maximumf %64, %65 : vector<16x128xf32>
    %67 = arith.addf %66, %59 : vector<16x128xf32>
    %cst_30 = arith.constant 0.000000e+00 : f32
    %68 = vector.broadcast %cst_30 : f32 to vector<16x128xf32>
    %69 = arith.maximumf %67, %68 : vector<16x128xf32>
    %c0_31 = arith.constant 0 : index
    %c0_32 = arith.constant 0 : index
    %70 = vector.load %arg4[%c0_31, %c0_32] : memref<16x128xf32, #tpu.memory_space<vmem>>, vector<16x128xf32>
    tpu.vector_store %arg4[%c0_31, %c0_32], %69 {strides = array<i32>} : memref<16x128xf32, #tpu.memory_space<vmem>>, vector<16x128xf32>,
    return
  }
  func.func @transform_0(%arg0: i32) -> (i32, i32) {
    %c0_i32 = arith.constant 0 : i32
    %c0_i32_0 = arith.constant 0 : i32
    return %c0_i32, %arg0 : i32, i32
  }
  func.func @transform_1(%arg0: i32) -> (i32, i32, i32) {
    %c0_i32 = arith.constant 0 : i32
    %c0_i32_0 = arith.constant 0 : i32
    %c0_i32_1 = arith.constant 0 : i32
    %c0_i32_2 = arith.constant 0 : i32
    return %c0_i32, %c0_i32_0, %c0_i32_1 : i32, i32, i32
  }
  func.func @transform_2(%arg0: i32) -> (i32, i32, i32) {
    %c0_i32 = arith.constant 0 : i32
    %c0_i32_0 = arith.constant 0 : i32
    %c0_i32_1 = arith.constant 0 : i32
    %c0_i32_2 = arith.constant 0 : i32
    return %c0_i32, %c0_i32_0, %c0_i32_1 : i32, i32, i32
  }
  func.func @transform_3(%arg0: i32) -> (i32, i32) {
    %c0_i32 = arith.constant 0 : i32
    %c0_i32_0 = arith.constant 0 : i32
    return %c0_i32, %arg0 : i32, i32
  }
}

</mosaic_0001>

<bundles_post_ra>
// kernel: temporal_conv_net_forward.1
= control target key start
LH: loop header
LB: loop body
LE: loop exit
PB: predicated region body
PF: predicated region fallthrough
CT: control target
= control target key end

     0   :  { %v435_v0 = vmov 0   ;;  %vm48_vm0 = vcmask 130048   ;;  %s594_s2 = inlined_call_operand.vmem [shape: f32[3,48,1], index: 2, kind: input, shape index: {}]   ;;  %s595_s0 = inlined_call_operand.vmem [shape: f32[16,128], index: 0, kind: input, shape index: {}]   ;;  %s596_s1 = inlined_call_operand.vmem [shape: f32[3,48,16], index: 1, kind: input, shape index: {}]   ;;  %s597_s3 = inlined_call_operand.vmem [shape: f32[16,128], index: 3, kind: output, shape index: {}]  }
   0x1   :  { %432 = vset.pattern.permute.xlu0 %v435_v0  ;;  %v23_v1 = vld [vmem:[%s594_s2 + $0x8] sm:$0xff]  ;;  %v14_v3 = vld [vmem:[%s595_s0] sm:$0xff]  ;;  %433 = vset.pattern.permute.xlu1 %v435_v0  ;;  %v400_v7 = vld [vmem:[%s594_s2 + $0x38] sm:$0xff] }
   0x2   :  { %v15_v2 = vld [vmem:[%s595_s0 + $0x8] sm:$0xff]  ;;  %35 = vperm.xlu0 %432, %v23_v1   ;;  %v16_v4 = vld [vmem:[%s596_s1] sm:$0xff]  ;;  %434 = vset.pattern.permute.xlu2 %v435_v0  ;;  %v25_v12 = vld [vmem:[%s594_s2 + $0x18] sm:$0xff] }
   0x3   :  { %75 = vmatpush.msra.mxu0 %v15_v2  ;;  %v22_v5 = vld [vmem:[%s594_s2] sm:$0xff]  ;;  %v17_v6 = vld [vmem:[%s596_s1 + $0x8] sm:$0xff]  ;;  %v399_v13 = vld [vmem:[%s594_s2 + $0x30] sm:$0xff] }
   0x4   :  { %v402_v8 = vld [vmem:[%s594_s2 + $0x48] sm:$0xff]  ;;  %v18_v14 = vld [vmem:[%s596_s1 + $0x10] sm:$0xff]  ;;  %v26_v16 = vld [vmem:[%s594_s2 + $0x20] sm:$0xff] }
   0x5   :  { %76 = vmatpush.msra.mxu0 %v14_v3  ;;  %v418_v9 = vld [vmem:[%s594_s2 + $0x68] sm:$0xff]  ;;  %v403_v15 = vld [vmem:[%s594_s2 + $0x50] sm:$0xff]  ;;  %v19_v17 = vld [vmem:[%s596_s1 + $0x18] sm:$0xff]  ;;  %94 = vperm.xlu2 %434, %v26_v16  }
   0x6   :  { %387 = vmatmul.msk.f32.vlgmr.msra.gmra.mxu0 %vm48_vm0, %v16_v4  ;;  %v422_v10 = vld [vmem:[%s594_s2 + $0x88] sm:$0xff]  ;;  %v417_v18 = vld [vmem:[%s594_s2 + $0x60] sm:$0xff]  ;;  %v24_v19 = vld [vmem:[%s594_s2 + $0x10] sm:$0xff] }
   0x7   :  { %v27_v11 = vld [vmem:[%s594_s2 + $0x28] sm:$0xff]  ;;  %v419_v20 = vld [vmem:[%s594_s2 + $0x70] sm:$0xff]  ;;  %v404_v21 = vld [vmem:[%s594_s2 + $0x58] sm:$0xff] }
   0x8   :  { %99 = vperm.xlu1 %433, %v27_v11   ;;  %v401_v22 = vld [vmem:[%s594_s2 + $0x40] sm:$0xff]  ;;  %v21_v33 = vld [vmem:[%s596_s1 + $0x28] sm:$0xff]  ;;  %v420_v34 = vld [vmem:[%s594_s2 + $0x78] sm:$0xff] }
   0x9   :  { %v421_v25 = vld [vmem:[%s594_s2 + $0x80] sm:$0xff]  ;;  %v393_v53 = vld [vmem:[%s596_s1 + $0x30] sm:$0xff]  ;;  %v394_v54 = vld [vmem:[%s596_s1 + $0x38] sm:$0xff] }
   0xa   :  { %30 = vperm.xlu0 %432, %v22_v5   ;;  %v20_v32 = vld [vmem:[%s596_s1 + $0x20] sm:$0xff]  ;;  %v396_v56 = vld [vmem:[%s596_s1 + $0x48] sm:$0xff]  ;;  %v397_v1 = vld [vmem:[%s596_s1 + $0x50] sm:$0xff] }
   0xb   :  { %v395_v55 = vld [vmem:[%s596_s1 + $0x40] sm:$0xff]  ;;  %v398_v2 = vld [vmem:[%s596_s1 + $0x58] sm:$0xff] }
   0xd   :  { %40 = vperm.xlu2 %434, %v24_v19  }
   0xe   :  { %388 = vmatmul.msk.f32.gmra.mxu0 %vm48_vm0, %v17_v6 }
  0x10   :  { %45 = vperm.xlu1 %433, %v25_v12  }
  0x12   :  { %158 = vperm.xlu0 %432, %v400_v7  }
  0x15   :  { %221 = vperm.xlu2 %434, %v404_v21   ;;  %v411_v21 = vld [vmem:[%s596_s1 + $0x60] sm:$0xff] }
  0x16   :  { %389 = vmatmul.msk.f32.gmra.mxu0 %vm48_vm0, %v18_v14 }
  0x18   :  { %153 = vperm.xlu1 %433, %v399_v13  }
  0x1a   :  { %168 = vperm.xlu0 %432, %v402_v8  }
  0x1d   :  { %163 = vperm.xlu2 %434, %v401_v22   ;;  %v412_v22 = vld [vmem:[%s596_s1 + $0x68] sm:$0xff] }
  0x1e   :  { %390 = vmatmul.msk.f32.gmra.mxu0 %vm48_vm0, %v19_v17 }
  0x20   :  { %216 = vperm.xlu1 %433, %v403_v15  }
  0x22   :  { %280 = vperm.xlu0 %432, %v418_v9  }
  0x25   :  { %338 = vperm.xlu2 %434, %v421_v25  }
  0x28   :  { %275 = vperm.xlu1 %433, %v417_v18  }
  0x2a   :  { %343 = vperm.xlu0 %432, %v422_v10  }
  0x2d   :  { %290 = vperm.xlu2 %434, %v420_v34   ;;  %v416_v34 = vld [vmem:[%s596_s1 + $0x88] sm:$0xff] }
  0x30   :  { %285 = vperm.xlu1 %433, %v419_v20  }
  0x5f   :  { %v95_v38 = vpop.permute.xlu2 %94 }
  0x67   :  { %v41_v44 = vpop.permute.xlu2 %40 }
  0x6f   :  { %v222_v4 = vpop.permute.xlu2 %221 }
  0x74   :  { %v36_v23 = vpop.permute.xlu0 %35 }
  0x77   :  { %v164_v13 = vpop.permute.xlu2 %163 }
  0x7a   :  { %v100_v37 = vpop.permute.xlu1 %99 }
  0x7c   :  { %v31_v26 = vpop.permute.xlu0 %30 }
  0x82   :  { %v46_v43 = vpop.permute.xlu1 %45 }
  0x83   :  { %v78_v24 = vpop.f32.mrf.mxu0 }
  0x84   :  { %v79_v28 = vadd.f32 %v78_v24, %v31_v26  ;;  %v159_v58 = vpop.permute.xlu0 %158  ;;  %v414_v24 = vld [vmem:[%s596_s1 + $0x78] sm:$0xff] }
  0x86   :  { %v90_v31 = vmax.f32 %v79_v28, 0.0 }
  0x8a   :  { %v154_v59 = vpop.permute.xlu1 %153 }
  0x8b   :  { %v81_v27 = vpop.f32.mrf.mxu0 }
  0x8c   :  { %v82_v29 = vadd.f32 %v81_v27, %v36_v23  ;;  %v169_v12 = vpop.permute.xlu0 %168  ;;  %v413_v23 = vld [vmem:[%s596_s1 + $0x70] sm:$0xff] }
  0x8e   :  { %v91_v30 = vmax.f32 %v82_v29, 0.0 }
  0x90   :  { %122 = vmatpush.msrb.mxu0 %v91_v30  ;;  %429 = vmatpush.msra.mxu1 %v91_v30 }
  0x92   :  { %123 = vmatpush.msrb.mxu0 %v90_v31  ;;  %430 = vmatpush.msra.mxu1 %v90_v31  ;;  %v217_v6 = vpop.permute.xlu1 %216 }
  0x93   :  { %391 = vmatmul.msk.f32.vlgmr.msrb.gmra.mxu0 %vm48_vm0, %v20_v32  ;;  %392 = vmatmul.msk.f32.vlgmr.msra.gmra.mxu1 %vm48_vm0, %v21_v33  ;;  %v84_v35 = vpop.f32.mrf.mxu0  ;;  %v415_v33 = vld [vmem:[%s596_s1 + $0x80] sm:$0xff] }
  0x94   :  { %v85_v45 = vadd.f32 %v84_v35, %v41_v44  ;;  %v281_v26 = vpop.permute.xlu0 %280 }
  0x9a   :  { %v276_v27 = vpop.permute.xlu1 %275 }
  0x9b   :  { %v87_v36 = vpop.f32.mrf.mxu0 }
  0x9c   :  { %v88_v46 = vadd.f32 %v87_v36, %v46_v43  ;;  %v339_v36 = vpop.permute.xlu2 %338  ;;  %v344_v43 = vpop.permute.xlu0 %343 }
 0x110   :  { %v125_v39 = vpop.f32.mrf.mxu0  ;;  %v128_v40 = vpop.f32.mrf.mxu1 }
 0x111   :  { %v126_v41 = vadd.f32 %v125_v39, %v95_v38  ;;  %v129_v42 = vadd.f32 %v128_v40, %v100_v37  ;;  %v286_v39 = vpop.permute.xlu1 %285 }
 0x113   :  { %v131_v47 = vmax.f32 %v126_v41, 0.0  ;;  %v132_v48 = vmax.f32 %v129_v42, 0.0 }
 0x115   :  { %v134_v49 = vadd.f32 %v132_v48, %v88_v46  ;;  %v133_v50 = vadd.f32 %v131_v47, %v85_v45  ;;  %v291_v48 = vpop.permute.xlu2 %290 }
 0x117   :  { %v136_v51 = vmax.f32 %v134_v49, 0.0  ;;  %v135_v52 = vmax.f32 %v133_v50, 0.0 }
 0x119   :  { %197 = vmatpush.msra.mxu2 %v136_v51 }
 0x11b   :  { %198 = vmatpush.msra.mxu2 %v135_v52 }
 0x11c   :  { %405 = vmatmul.msk.f32.vlgmr.msra.gmra.mxu2 %vm48_vm0, %v393_v53 }
 0x124   :  { %406 = vmatmul.msk.f32.gmra.mxu2 %vm48_vm0, %v394_v54 }
 0x12c   :  { %407 = vmatmul.msk.f32.gmra.mxu2 %vm48_vm0, %v395_v55 }
 0x134   :  { %408 = vmatmul.msk.f32.gmra.mxu2 %vm48_vm0, %v396_v56 }
 0x19f   :  { %v200_v57 = vpop.f32.mrf.mxu2 }
 0x1a0   :  { %v201_v61 = vadd.f32 %v200_v57, %v154_v59 }
 0x1a2   :  { %v212_v0 = vmax.f32 %v201_v61, 0.0 }
 0x1a7   :  { %v203_v60 = vpop.f32.mrf.mxu2 }
 0x1a8   :  { %v204_v62 = vadd.f32 %v203_v60, %v159_v58 }
 0x1aa   :  { %v213_v63 = vmax.f32 %v204_v62, 0.0 }
 0x1ac   :  { %244 = vmatpush.msra.mxu3 %v213_v63 }
 0x1ae   :  { %245 = vmatpush.msra.mxu3 %v212_v0 }
 0x1af   :  { %409 = vmatmul.msk.f32.vlgmr.msra.gmra.mxu3 %vm48_vm0, %v397_v1  ;;  %v206_v3 = vpop.f32.mrf.mxu2 }
 0x1b0   :  { %v207_v14 = vadd.f32 %v206_v3, %v164_v13 }
 0x1b7   :  { %410 = vmatmul.msk.f32.gmra.mxu3 %vm48_vm0, %v398_v2  ;;  %v209_v8 = vpop.f32.mrf.mxu2 }
 0x1b8   :  { %v210_v15 = vadd.f32 %v209_v8, %v169_v12 }
 0x232   :  { %v247_v5 = vpop.f32.mrf.mxu3 }
 0x233   :  { %v248_v7 = vadd.f32 %v247_v5, %v217_v6 }
 0x235   :  { %v253_v10 = vmax.f32 %v248_v7, 0.0 }
 0x237   :  { %v255_v18 = vadd.f32 %v253_v10, %v207_v14 }
 0x239   :  { %v257_v20 = vmax.f32 %v255_v18, 0.0 }
 0x23a   :  { %v250_v9 = vpop.f32.mrf.mxu3 }
 0x23b   :  { %v251_v11 = vadd.f32 %v250_v9, %v222_v4 }
 0x23d   :  { %v254_v16 = vmax.f32 %v251_v11, 0.0 }
 0x23f   :  { %v256_v17 = vadd.f32 %v254_v16, %v210_v15 }
 0x241   :  { %v258_v19 = vmax.f32 %v256_v17, 0.0 }
 0x243   :  { %319 = vmatpush.msrb.mxu1 %v258_v19 }
 0x245   :  { %320 = vmatpush.msrb.mxu1 %v257_v20 }
 0x246   :  { %423 = vmatmul.msk.f32.vlgmr.msrb.gmra.mxu1 %vm48_vm0, %v411_v21 }
 0x24e   :  { %424 = vmatmul.msk.f32.gmra.mxu1 %vm48_vm0, %v412_v22 }
 0x256   :  { %425 = vmatmul.msk.f32.gmra.mxu1 %vm48_vm0, %v413_v23 }
 0x25e   :  { %426 = vmatmul.msk.f32.gmra.mxu1 %vm48_vm0, %v414_v24 }
 0x2c3   :  { %v322_v25 = vpop.f32.mrf.mxu1 }
 0x2c4   :  { %v323_v29 = vadd.f32 %v322_v25, %v276_v27 }
 0x2c6   :  { %v334_v32 = vmax.f32 %v323_v29, 0.0 }
 0x2cb   :  { %v325_v28 = vpop.f32.mrf.mxu1 }
 0x2cc   :  { %v326_v30 = vadd.f32 %v325_v28, %v281_v26 }
 0x2ce   :  { %v335_v31 = vmax.f32 %v326_v30, 0.0 }
 0x2d0   :  { %366 = vmatpush.msrb.mxu3 %v335_v31 }
 0x2d2   :  { %367 = vmatpush.msrb.mxu3 %v334_v32 }
 0x2d3   :  { %427 = vmatmul.msk.f32.vlgmr.msrb.gmra.mxu3 %vm48_vm0, %v415_v33  ;;  %v328_v35 = vpop.f32.mrf.mxu1 }
 0x2d4   :  { %v329_v40 = vadd.f32 %v328_v35, %v286_v39 }
 0x2db   :  { %428 = vmatmul.msk.f32.gmra.mxu3 %vm48_vm0, %v416_v34  ;;  %v331_v45 = vpop.f32.mrf.mxu1 }
 0x2dc   :  { %v332_v49 = vadd.f32 %v331_v45, %v291_v48 }
 0x356   :  { %v369_v37 = vpop.f32.mrf.mxu3 }
 0x357   :  { %v370_v38 = vadd.f32 %v369_v37, %v339_v36 }
 0x359   :  { %v375_v41 = vmax.f32 %v370_v38, 0.0 }
 0x35b   :  { %v377_v42 = vadd.f32 %v375_v41, %v329_v40 }
 0x35d   :  { %v379_v44 = vmax.f32 %v377_v42, 0.0 }
 0x35e   :  { %v372_v46 = vpop.f32.mrf.mxu3 }
 0x35f   :  { %381 = vst [vmem:[%s597_s3] sm:$0xff] %v379_v44  ;;  %v373_v47 = vadd.f32 %v372_v46, %v344_v43 }
 0x361   :  { %v376_v50 = vmax.f32 %v373_v47, 0.0 }
 0x363   :  { %v378_v51 = vadd.f32 %v376_v50, %v332_v49 }
 0x365   :  { %v380_v52 = vmax.f32 %v378_v51, 0.0 }
 0x367   :  { %382 = vst [vmem:[%s597_s3 + $0x8] sm:$0xff] %v380_v52 }

</bundles_post_ra>
